<compile_context>
chip_gen: v5e
topology: v5e:2x2
jax: 0.10.0
libtpu: 0.0.40
codegen_flags: <defaults>
</compile_context>

<pallas_src>
import functools

import jax
import jax.numpy as jnp
from jax import lax
from jax.experimental import pallas as pl
from jax.experimental.pallas import tpu as pltpu

BN_EPS = 1e-5
NEG = -1e30     # baked mask value (representable in bf16); exp(0.2*NEG - m) underflows to 0


# --------------------------------------------------------------------------------------
# Hardware-aware helpers
# --------------------------------------------------------------------------------------
def _round_up(v, m):
    return ((v + m - 1) // m) * m


@functools.lru_cache(maxsize=None)
def _vmem_budget():
    """~75% of this generation's per-core VMEM (64 MiB on v7x, 128 MiB on v5e/v6e)."""
    cap = 64 * 1024 * 1024                                  # conservative fallback (v7x)
    try:
        cap = int(getattr(pltpu.get_tpu_info(), "vmem_capacity_bytes", cap))
    except Exception:
        pass
    return (cap * 3) // 4


@functools.lru_cache(maxsize=None)
def _unfuse_conv3_head():
    """v7x has two TensorCores; the fused conv3+head kernel needs an 'arbitrary' grid
    (strictly sequential on one core), so unfuse there; keep the fusion on v5e/v6e."""
    try:
        kind = jax.devices()[0].device_kind.lower()
        return ("v7" in kind) or ("tpu7" in kind)
    except Exception:
        return False


@functools.lru_cache(maxsize=None)
def _single_buffer_ok():
    """Probe whether pipeline_mode=pl.Buffered(1) (single-buffering of constant-index-map
    operands) is supported by this JAX build; otherwise fall back to default buffering."""
    try:
        def _copy(x_ref, o_ref):
            o_ref[...] = x_ref[...]
        spec = pl.BlockSpec((8, 128), lambda i: (0, 0),
                            pipeline_mode=pl.Buffered(buffer_count=1))
        f = pl.pallas_call(_copy,
                           out_shape=jax.ShapeDtypeStruct((8, 128), jnp.float32),
                           grid=(1,),
                           in_specs=[spec],
                           out_specs=pl.BlockSpec((8, 128), lambda i: (0, 0)))
        jax.block_until_ready(f(jnp.ones((8, 128), jnp.float32)))
        return True
    except Exception:
        return False


def _whole(shape):
    z = (0,) * len(shape)
    return pl.BlockSpec(shape, lambda i, _z=z: _z)


def _const_spec(shape):
    """Full-array block with a constant index map; single-buffered when supported
    (these operands never change across the grid; double-buffering only costs VMEM)."""
    z = (0,) * len(shape)
    if _single_buffer_ok():
        return pl.BlockSpec(shape, lambda i, _z=z: _z,
                            pipeline_mode=pl.Buffered(buffer_count=1))
    return pl.BlockSpec(shape, lambda i, _z=z: _z)


def _cparams(sem):
    return pltpu.CompilerParams(dimension_semantics=sem, vmem_limit_bytes=_vmem_budget())


def _pick_tile(n, heads, chead, fn):
    """Largest dst-row tile whose pipelined working set fits the VMEM budget.
    Streamed (double-buffered): eb (H,T,N) bf16, dst-row tile (H,T,C) f32,
    row-max (H,T,1) f32, out (T,Fn) f32.  Resident constants counted once
    (twice when single-buffering is unsupported)."""
    budget = _vmem_budget()
    const = 4 * (heads * n * chead + heads * chead * fn + 2 * heads * chead)
    if not _single_buffer_ok():
        const *= 2
    for t in (512, 256, 128, 64, 32, 16):      # multiples of 16: bf16 sublane packing
        if n % t or t >= n:
            continue
        stream = 2 * (2 * heads * t * n + 4 * heads * t * chead + 4 * heads * t + 4 * t * fn)
        if const + stream <= budget:
            return t
    # TODO(synk): pad N to a tile-friendly multiple; a whole-array block disables pipelining.
    return n


# --------------------------------------------------------------------------------------
# Pallas kernels
# --------------------------------------------------------------------------------------
def _attn_kernel(xw_ref, xwd_ref, attdst_ref, rowmax_ref, eb_ref,
                 scale_ref, shift_ref, wnext_ref, out_ref, *, heads):
    """One dst-row tile of a concat=True GAT layer (operands head-major):
      xw:     (H, N, C)  resident projected source features
      xwd:    (H, T, C)  streamed dst-row tile of the same array
      attdst: (H, C, 1)  per-head att_dst vector
      rowmax: (H, T, 1)  precomputed max_j eb[h, row, j] (from the bake pass)
      eb:     (H, T, N)  bf16 baked bias = a_src[j] + a_edge, NEG at non-edges (streamed)
      scale/shift: (H, 1, C) fused eval-mode BN (conv bias folded into shift)
      wnext:  (H, C, Fn) next layer's linear weight, split per head
      out:    (T, Fn)    relu(bn(aggregate)) @ W_next  (next layer's projected features)
    """
    out_ref[...] = jnp.zeros_like(out_ref)

    def head(h, carry):
        a_dst = jnp.dot(xwd_ref[h], attdst_ref[h],
                        preferred_element_type=jnp.float32)             # (T, 1)
        m = rowmax_ref[h] + a_dst                                       # max commutes with the
        m = jnp.maximum(m, 0.2 * m)                                     # monotone LeakyReLU
        logits = eb_ref[h].astype(jnp.float32) + a_dst                  # (T, N), bf16 -> f32
        logits = jnp.maximum(logits, 0.2 * logits)                      # LeakyReLU(0.2)
        p = jnp.exp(logits - m)                                         # masked cols -> exact 0
        agg = jnp.dot(p, xw_ref[h], preferred_element_type=jnp.float32)  # (T, C), un-normalized
        agg = agg * pl.reciprocal(jnp.sum(p, axis=1, keepdims=True), approx=True)
        hpart = jnp.maximum(agg * scale_ref[h] + shift_ref[h], 0.0)
        out_ref[...] += jnp.dot(hpart, wnext_ref[h], preferred_element_type=jnp.float32)
        return carry

    lax.fori_loop(0, heads, head, 0)


def _attn3_head_kernel(xw_ref, xwd_ref, attdst_ref, rowmax_ref, eb_ref,
                       scale_ref, shift_ref, pool_ref, ef_ref,
                       we1_ref, be1_ref, we2_ref, be2_ref,
                       wf1p_ref, wf1e_ref, bf1_ref, wf2_ref, bf2_ref,
                       out_ref, pooled_ref, comb_ref, h_scratch, *, heads, tile):
    """conv3 (concat=False, mean over heads) fused with global_mean_pool + experimental MLP
    + combine head.  Per-tile node features are staged in VMEM scratch; the pooled matmul
    and the MLP head run once at the last grid step.  The grid axis is 'arbitrary', i.e.
    strictly sequential on one core, so the scratch accumulation cannot race."""
    i = pl.program_id(0)
    row0 = pl.multiple_of(i * tile, tile)
    chead = h_scratch.shape[1]

    def head(h, acc):
        a_dst = jnp.dot(xwd_ref[h], attdst_ref[h], preferred_element_type=jnp.float32)
        m = rowmax_ref[h] + a_dst
        m = jnp.maximum(m, 0.2 * m)
        logits = eb_ref[h].astype(jnp.float32) + a_dst
        logits = jnp.maximum(logits, 0.2 * logits)
        p = jnp.exp(logits - m)
        agg = jnp.dot(p, xw_ref[h], preferred_element_type=jnp.float32)
        return acc + agg * pl.reciprocal(jnp.sum(p, axis=1, keepdims=True), approx=True)

    acc = lax.fori_loop(0, heads, head, jnp.zeros((tile, chead), jnp.float32))
    h_scratch[pl.ds(row0, tile), :] = jnp.maximum(
        acc * (1.0 / heads) * scale_ref[...] + shift_ref[...], 0.0)

    @pl.when(i == pl.num_programs(0) - 1)
    def _():
        pooled = jnp.dot(pool_ref[...], h_scratch[...], preferred_element_type=jnp.float32)
        e = jnp.maximum(jnp.dot(ef_ref[...], we1_ref[...],
                                preferred_element_type=jnp.float32) + be1_ref[...], 0.0)
        e = jnp.maximum(jnp.dot(e, we2_ref[...],
                                preferred_element_type=jnp.float32) + be2_ref[...], 0.0)
        comb = jnp.maximum(
            jnp.dot(pooled, wf1p_ref[...], preferred_element_type=jnp.float32)
            + jnp.dot(e, wf1e_ref[...], preferred_element_type=jnp.float32)
            + bf1_ref[...], 0.0)
        out_ref[...] = jnp.dot(comb, wf2_ref[...],
                               preferred_element_type=jnp.float32) + bf2_ref[...]
        pooled_ref[...] = pooled
        comb_ref[...] = comb


# --------------------------------------------------------------------------------------
# pallas_call wrappers
# --------------------------------------------------------------------------------------
def _fold_bn(conv, bn):
    scale = bn['gamma'] / jnp.sqrt(bn['var'] + BN_EPS)
    shift = bn['beta'] + (conv['bias'] - bn['mean']) * scale        # conv bias folded in
    return scale[None, :], shift[None, :]


def _attn_layer(xw_flat, eb, rowmax, conv, scale, shift, w_next):
    """GAT attention layer tiled over destination rows; emits next layer's projection."""
    n = xw_flat.shape[0]
    h, c = conv['heads'], conv['chead']
    fn = w_next.shape[1]
    tile = _pick_tile(n, h, c, fn)
    xw_h = jnp.transpose(xw_flat.reshape(n, h, c), (1, 0, 2))       # (H, N, C)
    attdst_h = conv['att_dst'][:, :, None]                          # (H, C, 1)
    scale_h = scale.reshape(h, 1, c)
    shift_h = shift.reshape(h, 1, c)
    wnext_h = w_next.reshape(h, c, fn)
    kern = functools.partial(_attn_kernel, heads=h)
    return pl.pallas_call(
        kern,
        out_shape=jax.ShapeDtypeStruct((n, fn), jnp.float32),
        grid=(n // tile,),
        in_specs=[
            _const_spec((h, n, c)),                                 # resident source features
            pl.BlockSpec((h, tile, c), lambda i: (0, i, 0)),        # streamed dst-row tile
            _const_spec((h, c, 1)),                                 # att_dst per head
            pl.BlockSpec((h, tile, 1), lambda i: (0, i, 0)),        # precomputed row max
            pl.BlockSpec((h, tile, n), lambda i: (0, i, 0)),        # bf16 edge bias (dominant)
            _const_spec((h, 1, c)),                                 # fused BN scale
            _const_spec((h, 1, c)),                                 # fused BN shift (+bias)
            _const_spec((h, c, fn)),                                # next layer's weight
        ],
        out_specs=pl.BlockSpec((tile, fn), lambda i: (i, 0)),
        compiler_params=_cparams(("parallel",)),
    )(xw_h, xw_h, attdst_h, rowmax, eb, scale_h, shift_h, wnext_h)


def _attn3_with_head(xw_flat, eb, rowmax, conv, scale, shift, pool, exp_feat, p):
    """conv3 fused with global_mean_pool + experimental MLP + combine head (v5e/v6e path)."""
    n = xw_flat.shape[0]
    h, c = conv['heads'], conv['chead']
    g = pool.shape[0]
    ein = exp_feat.shape[1]
    ehid = p['we1'].shape[1]
    comb = p['wf1'].shape[1]
    tile = _pick_tile(n, h, c, c)
    xw_h = jnp.transpose(xw_flat.reshape(n, h, c), (1, 0, 2))
    attdst_h = conv['att_dst'][:, :, None]
    wf1_pool, wf1_exp = p['wf1'][:c, :], p['wf1'][c:, :]            # split halves of fc1
    kern = functools.partial(_attn3_head_kernel, heads=h, tile=tile)
    return pl.pallas_call(
        kern,
        out_shape=(jax.ShapeDtypeStruct((g, 1), jnp.float32),
                   jax.ShapeDtypeStruct((g, c), jnp.float32),
                   jax.ShapeDtypeStruct((g, comb), jnp.float32)),
        grid=(n // tile,),
        in_specs=[
            _const_spec((h, n, c)),
            pl.BlockSpec((h, tile, c), lambda i: (0, i, 0)),
            _const_spec((h, c, 1)),
            pl.BlockSpec((h, tile, 1), lambda i: (0, i, 0)),
            pl.BlockSpec((h, tile, n), lambda i: (0, i, 0)),
            _const_spec((1, c)), _const_spec((1, c)),
            _const_spec((g, n)),                                    # mean-pool matrix
            _const_spec((g, ein)),
            _const_spec((ein, ehid)), _const_spec((1, ehid)),
            _const_spec((ehid, ehid)), _const_spec((1, ehid)),
            _const_spec((c, comb)), _const_spec((ehid, comb)), _const_spec((1, comb)),
            _const_spec((comb, 1)), _const_spec((1, 1)),
        ],
        out_specs=(_whole((g, 1)), _whole((g, c)), _whole((g, comb))),
        scratch_shapes=[pltpu.VMEM((n, c), jnp.float32)],
        compiler_params=_cparams(("arbitrary",)),                   # sequential scratch accum
    )(xw_h, xw_h, attdst_h, rowmax, eb, scale, shift, pool, exp_feat,
      p['we1'], p['be1'][None, :], p['we2'], p['be2'][None, :],
      wf1_pool, wf1_exp, p['bf1'][None, :], p['wf2'], p['bf2'][None, :])


# --------------------------------------------------------------------------------------
# JAX glue: parameters, dense-graph preprocessing, forward
# --------------------------------------------------------------------------------------
def make_params(key, gat_in, exp_in, gat_hidden, edge_dim, exp_hidden, comb_hidden, heads):
    keys = iter(jax.random.split(key, 64))

    def nrm(shape, s=0.1):
        return s * jax.random.normal(next(keys), shape, jnp.float32)

    def glorot(shape):
        lim = (6.0 / (shape[0] + shape[1])) ** 0.5
        return jax.random.uniform(next(keys), shape, jnp.float32, -lim, lim)

    def conv(fin, nheads, concat):
        fout = nheads * gat_hidden if concat else gat_hidden
        return dict(w=glorot((fin, nheads * gat_hidden)),
                    w_edge=glorot((edge_dim, nheads * gat_hidden)),
                    att_src=nrm((nheads, gat_hidden)),
                    att_dst=nrm((nheads, gat_hidden)),
                    att_edge=nrm((nheads, gat_hidden)),
                    bias=nrm((fout,)),
                    heads=nheads, chead=gat_hidden, concat=concat)

    def bn(f):
        return dict(gamma=1.0 + nrm((f,)), beta=nrm((f,)),
                    mean=nrm((f,)), var=0.9 + jnp.abs(nrm((f,))))

    def lin(fin, fout):
        return glorot((fin, fout)), nrm((fout,))

    p = {}
    p['conv1'], p['bn1'] = conv(gat_in, heads, True), bn(heads * gat_hidden)
    p['conv2'], p['bn2'] = conv(heads * gat_hidden, heads, True), bn(heads * gat_hidden)
    p['conv3'], p['bn3'] = conv(heads * gat_hidden, 1, False), bn(gat_hidden)  # heads=1
    p['we1'], p['be1'] = lin(exp_in, exp_hidden)
    p['we2'], p['be2'] = lin(exp_hidden, exp_hidden)
    p['wf1'], p['bf1'] = lin(gat_hidden + exp_hidden, comb_hidden)
    p['wf2'], p['bf2'] = lin(comb_hidden, 1)
    return p


def _bake_edge_bias(conv, xw, edge_attr, self_attr, src, dst, validf, mask, n):
    """Dense (H, N_dst, N_src) bf16 bias with a_src + a_edge baked in and non-edges = NEG
    (adjacency mask folded in), plus the per-(head, dst-row) max (H, N, 1) for the softmax
    shift (LeakyReLU is monotone; a_dst is constant along sources so the max commutes).
    The per-source term, mask and row max are fused into the same O(H*N^2) XLA pass the
    scatter already requires.
    NOTE: duplicate (src,dst) edges get summed into one logit (differs from PyG's segment
    softmax over multi-edges); fine for de-duplicated graphs.
    TODO(synk): at scale, replace this densification with an edge-tiled / CSR formulation
    using PrefetchScalarGridSpec (the dense O(H*N^2) stream hits the v5e roofline first)."""
    h, c = conv['heads'], conv['chead']
    a_e = jnp.einsum('ehc,hc->eh', (edge_attr @ conv['w_edge']).reshape(-1, h, c),
                     conv['att_edge']) * validf[:, None]               # (E, H)
    a_self = jnp.einsum('nhc,hc->nh', (self_attr @ conv['w_edge']).reshape(n, h, c),
                        conv['att_edge'])                               # (N, H)
    a_src = jnp.einsum('nhc,hc->hn', xw.reshape(n, h, c), conv['att_src'])  # (H, N)
    eb = jnp.zeros((h, n, n), jnp.float32).at[:, dst, src].add(a_e.T)
    d = jnp.arange(n)
    eb = eb.at[:, d, d].set(a_self.T)                                   # self-loop ('mean' fill)
    eb = jnp.where(mask[None, :, :] > 0.0, eb + a_src[:, None, :], NEG)
    rowmax = jnp.max(eb, axis=2, keepdims=True)                         # (H, N, 1) softmax shift
    return eb.astype(jnp.bfloat16), rowmax


def gnn_forward(p, x, edge_index, edge_attr, batch, exp_feat, num_graphs):
    n = x.shape[0]
    src, dst = edge_index[0], edge_index[1]
    validf = (src != dst).astype(jnp.float32)                  # GATConv: remove_self_loops
    mask = jnp.minimum(jnp.zeros((n, n), jnp.float32).at[dst, src].add(validf), 1.0)
    d = jnp.arange(n)
    mask = mask.at[d, d].set(1.0)                              # GATConv: add_self_loops
    deg = jnp.zeros((n, 1), jnp.float32).at[dst].add(validf[:, None])
    self_attr = jnp.zeros((n, edge_attr.shape[1]), jnp.float32).at[dst].add(
        edge_attr * validf[:, None]) / jnp.maximum(deg, 1.0)   # fill_value='mean'

    onehot = (batch[None, :] == jnp.arange(num_graphs)[:, None]).astype(jnp.float32)
    pool = onehot / jnp.maximum(onehot.sum(axis=1, keepdims=True), 1.0)   # (G, N)

    # layer 1: projection folded into XLA (K=GAT_in is tiny; a dedicated launch costs more)
    xw1 = x @ p['conv1']['w']
    eb1, rm1 = _bake_edge_bias(p['conv1'], xw1, edge_attr, self_attr, src, dst, validf, mask, n)
    s1, b1 = _fold_bn(p['conv1'], p['bn1'])
    xw2 = _attn_layer(xw1, eb1, rm1, p['conv1'], s1, b1, p['conv2']['w'])

    # layer 2: emits xw3 = h2 @ W3 (conv3's weight zero-padded to a lane-dense width)
    eb2, rm2 = _bake_edge_bias(p['conv2'], xw2, edge_attr, self_attr, src, dst, validf, mask, n)
    s2, b2 = _fold_bn(p['conv2'], p['bn2'])
    c3 = p['conv3']['chead']
    fn3 = _round_up(c3, 128)
    w3_pad = jnp.zeros((p['conv3']['w'].shape[0], fn3), jnp.float32).at[:, :c3].set(p['conv3']['w'])
    xw3 = _attn_layer(xw2, eb2, rm2, p['conv2'], s2, b2, w3_pad)[:, :c3]

    # layer 3 (+ pool / experimental MLP / combine head; Dropout = identity in eval mode)
    eb3, rm3 = _bake_edge_bias(p['conv3'], xw3, edge_attr, self_attr, src, dst, validf, mask, n)
    s3, b3 = _fold_bn(p['conv3'], p['bn3'])
    if _unfuse_conv3_head():
        # v7x: conv3 as a 'parallel' layer (both TensorCores); tiny head stays in XLA.
        eye_pad = jnp.zeros((c3, fn3), jnp.float32).at[:, :c3].set(jnp.eye(c3, dtype=jnp.float32))
        h3 = _attn_layer(xw3, eb3, rm3, p['conv3'], s3, b3, eye_pad)[:, :c3]
        pooled = pool @ h3
        e = jnp.maximum(exp_feat @ p['we1'] + p['be1'], 0.0)
        e = jnp.maximum(e @ p['we2'] + p['be2'], 0.0)
        combined = jnp.maximum(jnp.concatenate([pooled, e], axis=1) @ p['wf1'] + p['bf1'], 0.0)
        out = combined @ p['wf2'] + p['bf2']
        return out, pooled, combined
    return _attn3_with_head(xw3, eb3, rm3, p['conv3'], s3, b3, pool, exp_feat, p)


# --------------------------------------------------------------------------------------
# Pure-JAX reference (PyG-style segment softmax) for validation
# --------------------------------------------------------------------------------------
def ref_forward(p, x, edge_index, edge_attr, batch, exp_feat, num_graphs):
    n = x.shape[0]
    src, dst = edge_index[0], edge_index[1]
    keep = (src != dst).astype(jnp.float32)
    deg = jax.ops.segment_sum(keep, dst, num_segments=n)
    sattr = jax.ops.segment_sum(edge_attr * keep[:, None], dst, num_segments=n)
    sattr = sattr / jnp.maximum(deg, 1.0)[:, None]
    d = jnp.arange(n)
    src_sl = jnp.concatenate([src, d])
    dst_sl = jnp.concatenate([dst, d])
    ea_sl = jnp.concatenate([edge_attr, sattr], axis=0)

    def gat(h, conv, bn):
        nh, c, concat = conv['heads'], conv['chead'], conv['concat']
        xw = (h @ conv['w']).reshape(n, nh, c)
        a_s = jnp.einsum('nhc,hc->nh', xw, conv['att_src'])
        a_d = jnp.einsum('nhc,hc->nh', xw, conv['att_dst'])
        a_e = jnp.einsum('ehc,hc->eh', (ea_sl @ conv['w_edge']).reshape(-1, nh, c),
                         conv['att_edge'])
        logits = a_s[src_sl] + a_d[dst_sl] + a_e
        logits = jnp.where(logits >= 0.0, logits, 0.2 * logits)
        mx = jax.ops.segment_max(logits, dst_sl, num_segments=n)
        pe = jnp.exp(logits - mx[dst_sl])
        den = jax.ops.segment_sum(pe, dst_sl, num_segments=n)
        alpha = pe / den[dst_sl]
        out = jax.ops.segment_sum(alpha[:, :, None] * xw[src_sl], dst_sl, num_segments=n)
        out = out.reshape(n, nh * c) if concat else out.mean(axis=1)
        out = out + conv['bias']
        scale = bn['gamma'] / jnp.sqrt(bn['var'] + BN_EPS)
        out = out * scale + (bn['beta'] - bn['mean'] * scale)
        return jnp.maximum(out, 0.0)

    h = gat(x, p['conv1'], p['bn1'])
    h = gat(h, p['conv2'], p['bn2'])
    h = gat(h, p['conv3'], p['bn3'])
    onehot = (batch[None, :] == jnp.arange(num_graphs)[:, None]).astype(jnp.float32)
    pool = onehot / jnp.maximum(onehot.sum(1, keepdims=True), 1.0)
    pooled = pool @ h
    e = jnp.maximum(exp_feat @ p['we1'] + p['be1'], 0.0)
    e = jnp.maximum(e @ p['we2'] + p['be2'], 0.0)
    cat = jnp.concatenate([pooled, e], axis=1)
    comb = jnp.maximum(cat @ p['wf1'] + p['bf1'], 0.0)
    out = comb @ p['wf2'] + p['bf2']
    return out, pooled, comb


# --------------------------------------------------------------------------------------
if __name__ == "__main__":
    key = jax.random.PRNGKey(0)
    N_PER, G = 32, 2
    N = N_PER * G
    GAT_IN, EXP_IN, EDGE_DIM = 8, 6, 7
    GAT_HID, EXP_HID, COMB_HID, HEADS = 32, 32, 64, 4

    k_param, k_x, k_ea, k_exp = jax.random.split(key, 4)
    params = make_params(k_param, GAT_IN, EXP_IN, GAT_HID, EDGE_DIM, EXP_HID, COMB_HID, HEADS)

    # two graphs of 32 nodes each; 3 outgoing edges per node, no self-loops / duplicates
    srcs, dsts = [], []
    for g in range(G):
        base = g * N_PER
        for node in range(N_PER):
            for off in (1, 2, 3):
                srcs.append(base + node)
                dsts.append(base + (node + off) % N_PER)
    edge_index = jnp.array([srcs, dsts], dtype=jnp.int32)
    E = edge_index.shape[1]

    x = jax.random.normal(k_x, (N, GAT_IN), jnp.float32)
    edge_attr = jax.random.normal(k_ea, (E, EDGE_DIM), jnp.float32)
    exp_feat = jax.random.normal(k_exp, (G, EXP_IN), jnp.float32)
    batch = jnp.repeat(jnp.arange(G, dtype=jnp.int32), N_PER)

    out, pooled, combined = gnn_forward(params, x, edge_index, edge_attr, batch, exp_feat, G)
    jax.block_until_ready((out, pooled, combined))

    r_out, r_pooled, r_comb = ref_forward(params, x, edge_index, edge_attr, batch, exp_feat, G)
    # 2e-2 tolerance: the bf16 edge-bias stream (~0.4% logit rounding) and the approx EUP
    # reciprocal in the softmax each introduce small, documented deviations vs f32.
    ok = (jnp.allclose(out, r_out, rtol=2e-2, atol=2e-2)
          and jnp.allclose(pooled, r_pooled, rtol=2e-2, atol=2e-2)
          and jnp.allclose(combined, r_comb, rtol=2e-2, atol=2e-2))
    assert bool(ok), "Pallas kernel output mismatch vs JAX reference"
    print("KERNEL_OK")
</pallas_src>

<mosaic_0001>
module attributes {stable_mosaic.version = 11 : i64} {
  func.func @_copy(%arg0: i32, %arg1: memref<8x128xf32, #tpu.memory_space<vmem>>, %arg2: memref<8x128xf32, #tpu.memory_space<vmem>>) attributes {dimension_semantics = [#tpu.dimension_semantics<arbitrary>], iteration_bounds = array<i64: 1>, scalar_prefetch = 0 : i64, scratch_operands = 0 : i64, tpu.core_type = #tpu.core_type<tc>, window_params = [{pipeline_mode = #tpu.pipeline_mode<synchronous>, transform_indices = @transform_0, window_bounds = array<i64: 8, 128>}, {pipeline_mode = #tpu.pipeline_mode<synchronous>, transform_indices = @transform_1, window_bounds = array<i64: 8, 128>}]} {
    %c0 = arith.constant 0 : index
    %c0_0 = arith.constant 0 : index
    %0 = vector.load %arg1[%c0, %c0_0] : memref<8x128xf32, #tpu.memory_space<vmem>>, vector<8x128xf32>
    %c0_1 = arith.constant 0 : index
    %c0_2 = arith.constant 0 : index
    %1 = vector.load %arg2[%c0_1, %c0_2] : memref<8x128xf32, #tpu.memory_space<vmem>>, vector<8x128xf32>
    tpu.vector_store %arg2[%c0_1, %c0_2], %0 {strides = array<i32>} : memref<8x128xf32, #tpu.memory_space<vmem>>, vector<8x128xf32>,
    return
  }
  func.func @transform_0(%arg0: i32) -> (i32, i32) {
    %c0_i32 = arith.constant 0 : i32
    %c0_i32_0 = arith.constant 0 : i32
    %c0_i32_1 = arith.constant 0 : i32
    return %c0_i32, %c0_i32_0 : i32, i32
  }
  func.func @transform_1(%arg0: i32) -> (i32, i32) {
    %c0_i32 = arith.constant 0 : i32
    %c0_i32_0 = arith.constant 0 : i32
    %c0_i32_1 = arith.constant 0 : i32
    return %c0_i32, %c0_i32_0 : i32, i32
  }
}

module attributes {stable_mosaic.version = 11 : i64} {
  func.func @_attn_kernel(%arg0: i32, %arg1: memref<4x64x32xf32, #tpu.memory_space<vmem>>, %arg2: memref<4x32x32xf32, #tpu.memory_space<vmem>>, %arg3: memref<4x32x1xf32, #tpu.memory_space<vmem>>, %arg4: memref<4x32x1xf32, #tpu.memory_space<vmem>>, %arg5: memref<4x32x64xbf16, #tpu.memory_space<vmem>>, %arg6: memref<4x1x32xf32, #tpu.memory_space<vmem>>, %arg7: memref<4x1x32xf32, #tpu.memory_space<vmem>>, %arg8: memref<4x32x128xf32, #tpu.memory_space<vmem>>, %arg9: memref<32x128xf32, #tpu.memory_space<vmem>>) attributes {dimension_semantics = [#tpu.dimension_semantics<parallel>], iteration_bounds = array<i64: 2>, scalar_prefetch = 0 : i64, scratch_operands = 0 : i64, tpu.core_type = #tpu.core_type<tc>, window_params = [{pipeline_mode = #tpu.pipeline_mode<synchronous>, transform_indices = @transform_0, window_bounds = array<i64: 4, 64, 32>}, {transform_indices = @transform_1, window_bounds = array<i64: 4, 32, 32>}, {pipeline_mode = #tpu.pipeline_mode<synchronous>, transform_indices = @transform_2, window_bounds = array<i64: 4, 32, 1>}, {transform_indices = @transform_3, window_bounds = array<i64: 4, 32, 1>}, {transform_indices = @transform_4, window_bounds = array<i64: 4, 32, 64>}, {pipeline_mode = #tpu.pipeline_mode<synchronous>, transform_indices = @transform_5, window_bounds = array<i64: 4, 1, 32>}, {pipeline_mode = #tpu.pipeline_mode<synchronous>, transform_indices = @transform_6, window_bounds = array<i64: 4, 1, 32>}, {pipeline_mode = #tpu.pipeline_mode<synchronous>, transform_indices = @transform_7, window_bounds = array<i64: 4, 32, 128>}, {transform_indices = @transform_8, window_bounds = array<i64: 32, 128>}]} {
    %cst = arith.constant 0.000000e+00 : f32
    %0 = vector.broadcast %cst : f32 to vector<32x128xf32>
    %c0 = arith.constant 0 : index
    %c0_0 = arith.constant 0 : index
    %1 = vector.load %arg9[%c0, %c0_0] : memref<32x128xf32, #tpu.memory_space<vmem>>, vector<32x128xf32>
    tpu.vector_store %arg9[%c0, %c0_0], %0 {strides = array<i32>} : memref<32x128xf32, #tpu.memory_space<vmem>>, vector<32x128xf32>,
    %c0_i32 = arith.constant 0 : i32
    %c4_i32 = arith.constant 4 : i32
    %2 = arith.addi %c0_i32, %c4_i32 : i32
    %c1_i32 = arith.constant 1 : i32
    scf.for %arg10 = %c0_i32 to %2 step %c1_i32  : i32 {
      %3 = arith.index_cast %arg10 : i32 to index
      %c0_2 = arith.constant 0 : index
      %c0_3 = arith.constant 0 : index
      %4 = vector.load %arg2[%3, %c0_2, %c0_3] : memref<4x32x32xf32, #tpu.memory_space<vmem>>, vector<1x32x32xf32>
      %5 = vector.shape_cast %4 : vector<1x32x32xf32> to vector<32x32xf32>
      %6 = arith.index_cast %arg10 : i32 to index
      %c0_4 = arith.constant 0 : index
      %c0_5 = arith.constant 0 : index
      %7 = vector.load %arg3[%6, %c0_4, %c0_5] : memref<4x32x1xf32, #tpu.memory_space<vmem>>, vector<1x32x1xf32>
      %8 = vector.shape_cast %7 : vector<1x32x1xf32> to vector<32x1xf32>
      %cst_6 = arith.constant dense<0.000000e+00> : vector<32x1xf32>
      %9 = tpu.matmul %5, %8, %cst_6 {dimension_numbers = #tpu.dot_dimension_numbers<[1], [0], [0], [1], [0, 0, 1, 1], [], []>} : vector<32x32xf32>, vector<32x1xf32>, vector<32x1xf32> -> vector<32x1xf32>
      %10 = arith.index_cast %arg10 : i32 to index
      %c0_7 = arith.constant 0 : index
      %c0_8 = arith.constant 0 : index
      %11 = vector.load %arg4[%10, %c0_7, %c0_8] : memref<4x32x1xf32, #tpu.memory_space<vmem>>, vector<1x32x1xf32>
      %12 = vector.shape_cast %11 : vector<1x32x1xf32> to vector<32x1xf32>
      %13 = arith.addf %12, %9 : vector<32x1xf32>
      %cst_9 = arith.constant 2.000000e-01 : f32
      %14 = vector.broadcast %cst_9 : f32 to vector<32x1xf32>
      %15 = arith.mulf %14, %13 : vector<32x1xf32>
      %16 = arith.maximumf %13, %15 : vector<32x1xf32>
      %17 = arith.index_cast %arg10 : i32 to index
      %c0_10 = arith.constant 0 : index
      %c0_11 = arith.constant 0 : index
      %18 = vector.load %arg5[%17, %c0_10, %c0_11] : memref<4x32x64xbf16, #tpu.memory_space<vmem>>, vector<1x32x64xbf16>
      %19 = vector.shape_cast %18 : vector<1x32x64xbf16> to vector<32x64xbf16>
      %20 = arith.extf %19 : vector<32x64xbf16> to vector<32x64xf32>
      %21 = vector.broadcast %9 : vector<32x1xf32> to vector<32x64xf32>
      %22 = arith.addf %20, %21 : vector<32x64xf32>
      %cst_12 = arith.constant 2.000000e-01 : f32
      %23 = vector.broadcast %cst_12 : f32 to vector<32x64xf32>
      %24 = arith.mulf %23, %22 : vector<32x64xf32>
      %25 = arith.maximumf %22, %24 : vector<32x64xf32>
      %26 = vector.broadcast %16 : vector<32x1xf32> to vector<32x64xf32>
      %27 = arith.subf %25, %26 : vector<32x64xf32>
      %28 = math.exp %27 : vector<32x64xf32>
      %29 = arith.index_cast %arg10 : i32 to index
      %c0_13 = arith.constant 0 : index
      %c0_14 = arith.constant 0 : index
      %30 = vector.load %arg1[%29, %c0_13, %c0_14] : memref<4x64x32xf32, #tpu.memory_space<vmem>>, vector<1x64x32xf32>
      %31 = vector.shape_cast %30 : vector<1x64x32xf32> to vector<64x32xf32>
      %cst_15 = arith.constant dense<0.000000e+00> : vector<32x32xf32>
      %32 = tpu.matmul %28, %31, %cst_15 {dimension_numbers = #tpu.dot_dimension_numbers<[1], [0], [0], [1], [0, 0, 1, 1], [], []>} : vector<32x64xf32>, vector<64x32xf32>, vector<32x32xf32> -> vector<32x32xf32>
      %cst_16 = arith.constant dense<0.000000e+00> : vector<32xf32>
      %33 = vector.multi_reduction <add>, %28, %cst_16 [1] : vector<32x64xf32> to vector<32xf32>
      %34 = vector.shape_cast %33 : vector<32xf32> to vector<32x1xf32>
      %35 = tpu.reciprocal %34 {approx = true} : vector<32x1xf32> -> vector<32x1xf32>
      %36 = vector.broadcast %35 : vector<32x1xf32> to vector<32x32xf32>
      %37 = arith.mulf %32, %36 : vector<32x32xf32>
      %38 = arith.index_cast %arg10 : i32 to index
      %c0_17 = arith.constant 0 : index
      %c0_18 = arith.constant 0 : index
      %39 = vector.load %arg6[%38, %c0_17, %c0_18] : memref<4x1x32xf32, #tpu.memory_space<vmem>>, vector<1x1x32xf32>
      %40 = vector.shape_cast %39 : vector<1x1x32xf32> to vector<1x32xf32>
      %41 = vector.broadcast %40 : vector<1x32xf32> to vector<32x32xf32>
      %42 = arith.mulf %37, %41 : vector<32x32xf32>
      %43 = arith.index_cast %arg10 : i32 to index
      %c0_19 = arith.constant 0 : index
      %c0_20 = arith.constant 0 : index
      %44 = vector.load %arg7[%43, %c0_19, %c0_20] : memref<4x1x32xf32, #tpu.memory_space<vmem>>, vector<1x1x32xf32>
      %45 = vector.shape_cast %44 : vector<1x1x32xf32> to vector<1x32xf32>
      %46 = vector.broadcast %45 : vector<1x32xf32> to vector<32x32xf32>
      %47 = arith.addf %42, %46 : vector<32x32xf32>
      %cst_21 = arith.constant 0.000000e+00 : f32
      %48 = vector.broadcast %cst_21 : f32 to vector<32x32xf32>
      %49 = arith.maximumf %47, %48 : vector<32x32xf32>
      %c0_22 = arith.constant 0 : index
      %c0_23 = arith.constant 0 : index
      %50 = vector.load %arg9[%c0_22, %c0_23] : memref<32x128xf32, #tpu.memory_space<vmem>>, vector<32x128xf32>
      %51 = arith.index_cast %arg10 : i32 to index
      %c0_24 = arith.constant 0 : index
      %c0_25 = arith.constant 0 : index
      %52 = vector.load %arg8[%51, %c0_24, %c0_25] : memref<4x32x128xf32, #tpu.memory_space<vmem>>, vector<1x32x128xf32>
      %53 = vector.shape_cast %52 : vector<1x32x128xf32> to vector<32x128xf32>
      %cst_26 = arith.constant dense<0.000000e+00> : vector<32x128xf32>
      %54 = tpu.matmul %49, %53, %cst_26 {dimension_numbers = #tpu.dot_dimension_numbers<[1], [0], [0], [1], [0, 0, 1, 1], [], []>} : vector<32x32xf32>, vector<32x128xf32>, vector<32x128xf32> -> vector<32x128xf32>
      %55 = arith.addf %50, %54 : vector<32x128xf32>
      %c0_27 = arith.constant 0 : index
      %c0_28 = arith.constant 0 : index
      %56 = vector.load %arg9[%c0_27, %c0_28] : memref<32x128xf32, #tpu.memory_space<vmem>>, vector<32x128xf32>
      tpu.vector_store %arg9[%c0_27, %c0_28], %55 {strides = array<i32>} : memref<32x128xf32, #tpu.memory_space<vmem>>, vector<32x128xf32>,
    }
    %c4_i32_1 = arith.constant 4 : i32
    return
  }
  func.func @transform_0(%arg0: i32) -> (i32, i32, i32) {
    %c0_i32 = arith.constant 0 : i32
    %c0_i32_0 = arith.constant 0 : i32
    %c0_i32_1 = arith.constant 0 : i32
    %c0_i32_2 = arith.constant 0 : i32
    return %c0_i32, %c0_i32_0, %c0_i32_1 : i32, i32, i32
  }
  func.func @transform_1(%arg0: i32) -> (i32, i32, i32) {
    %c0_i32 = arith.constant 0 : i32
    %c0_i32_0 = arith.constant 0 : i32
    %c0_i32_1 = arith.constant 0 : i32
    return %c0_i32, %arg0, %c0_i32_0 : i32, i32, i32
  }
  func.func @transform_2(%arg0: i32) -> (i32, i32, i32) {
    %c0_i32 = arith.constant 0 : i32
    %c0_i32_0 = arith.constant 0 : i32
    %c0_i32_1 = arith.constant 0 : i32
    %c0_i32_2 = arith.constant 0 : i32
    return %c0_i32, %c0_i32_0, %c0_i32_1 : i32, i32, i32
  }
  func.func @transform_3(%arg0: i32) -> (i32, i32, i32) {
    %c0_i32 = arith.constant 0 : i32
    %c0_i32_0 = arith.constant 0 : i32
    %c0_i32_1 = arith.constant 0 : i32
    return %c0_i32, %arg0, %c0_i32_0 : i32, i32, i32
  }
  func.func @transform_4(%arg0: i32) -> (i32, i32, i32) {
    %c0_i32 = arith.constant 0 : i32
    %c0_i32_0 = arith.constant 0 : i32
    %c0_i32_1 = arith.constant 0 : i32
    return %c0_i32, %arg0, %c0_i32_0 : i32, i32, i32
  }
  func.func @transform_5(%arg0: i32) -> (i32, i32, i32) {
    %c0_i32 = arith.constant 0 : i32
    %c0_i32_0 = arith.constant 0 : i32
    %c0_i32_1 = arith.constant 0 : i32
    %c0_i32_2 = arith.constant 0 : i32
    return %c0_i32, %c0_i32_0, %c0_i32_1 : i32, i32, i32
  }
  func.func @transform_6(%arg0: i32) -> (i32, i32, i32) {
    %c0_i32 = arith.constant 0 : i32
    %c0_i32_0 = arith.constant 0 : i32
    %c0_i32_1 = arith.constant 0 : i32
    %c0_i32_2 = arith.constant 0 : i32
    return %c0_i32, %c0_i32_0, %c0_i32_1 : i32, i32, i32
  }
  func.func @transform_7(%arg0: i32) -> (i32, i32, i32) {
    %c0_i32 = arith.constant 0 : i32
    %c0_i32_0 = arith.constant 0 : i32
    %c0_i32_1 = arith.constant 0 : i32
    %c0_i32_2 = arith.constant 0 : i32
    return %c0_i32, %c0_i32_0, %c0_i32_1 : i32, i32, i32
  }
  func.func @transform_8(%arg0: i32) -> (i32, i32) {
    %c0_i32 = arith.constant 0 : i32
    %c0_i32_0 = arith.constant 0 : i32
    return %arg0, %c0_i32 : i32, i32
  }
}

</mosaic_0001>

<bundles_post_ra>
// kernel: tpu_custom_call.1
= control target key start
LH: loop header
LB: loop body
LE: loop exit
PB: predicated region body
PF: predicated region fallthrough
CT: control target
= control target key end

     0   :  { %6 = vsyncpa [#allocation3], 0  ;;  %s114_s0 = inlined_call_operand.hbm [shape: f32[8,128], index: 0, kind: input, shape index: {}]   ;;  %s115_s1 = inlined_call_operand.hbm [shape: f32[8,128], index: 1, kind: output, shape index: {}]  }
   0x1   :  { %7 = vsyncpa [#allocation4], 0  ;;  %s13_s8 = sshll.u32 %s114_s0, 4  ;;  %s96_s9 = smov [#allocation2]   ;;  %s14_s8 = int_to_ptr.hbm [resolvable:$true] %s13_s8 }
   0x2   :  { %s15_s10 = sshll.u32 %s96_s9, 4  ;;  %s16_s10 = int_to_ptr.vmem [resolvable:$true] %s15_s10 }
   0x3   :  { %18 = dma.hbm_to_vmem [thread:$0]  %s14_s8, 128, %s16_s10, [#allocation3]  }
   0x4   :  { %92 = dma.done.wait [#allocation3], 128  }
   0x5   :  { %93 = vsyncadd [#allocation3], 4294967168  ;;  %s97_s11 = smov [#allocation5]   ;;  %s32_s15 = sshll.u32 %s115_s1, 4  ;;  %v23_v0 = vld [vmem:[#allocation2] sm:$0xff]  ;;  %s33_s15 = int_to_ptr.hbm [resolvable:$true] %s32_s15 }
   0x6   :  { %s30_s12 = sshll.u32 %s97_s11, 4  ;;  %24 = vst [vmem:[#allocation5] sm:$0xff] %v23_v0  ;;  %s31_s12 = int_to_ptr.vmem [resolvable:$true] %s30_s12 }
   0x7   :  { %35 = dma.vmem_to_hbm [thread:$0]  %s31_s12, 128, %s33_s15, [#allocation4]  }
   0x8   :  { %94 = dma.done.wait [#allocation4], 128  }
   0x9   :  { %95 = vsyncadd [#allocation4], 4294967168 }
   0xa   :  { %40 = vsyncpa [#allocation3], 1 }
   0xb   :  { %41 = vsyncpa [#allocation4], 1 }

// kernel: tpu_custom_call.1
= control target key start
LH: loop header
LB: loop body
LE: loop exit
PB: predicated region body
PF: predicated region fallthrough
CT: control target
= control target key end

     0   :  { %s1579_s0 = inlined_call_operand.vmem [shape: f32[4,64,32], index: 0, kind: input, shape index: {}]   ;;  %s1580_s1 = inlined_call_operand.vmem [shape: f32[4,64,32], index: 1, kind: input, shape index: {}]   ;;  %s1581_s2 = inlined_call_operand.vmem [shape: f32[4,32,1], index: 2, kind: input, shape index: {}]   ;;  %s1582_s3 = inlined_call_operand.vmem [shape: f32[4,64,1], index: 3, kind: input, shape index: {}]   ;;  %s1583_s4 = inlined_call_operand.vmem [shape: bf16[4,64,64], index: 4, kind: input, shape index: {}]   ;;  %s1584_s5 = inlined_call_operand.vmem [shape: f32[4,1,32], index: 5, kind: input, shape index: {}]   ;;  %s1585_s6 = inlined_call_operand.vmem [shape: f32[4,1,32], index: 6, kind: input, shape index: {}]   ;;  %s1586_s7 = inlined_call_operand.vmem [shape: f32[4,32,128], index: 7, kind: input, shape index: {}]   ;;  %s1587_s8 = inlined_call_operand.hbm [shape: f32[64,128], index: 8, kind: output, shape index: {}]  }
   0x1   :  { %1589 = sst [smem:[#allocation8_spill]] %s1579_s0 }
   0x2   :  { %1590 = sst [smem:[#allocation9_spill]] %s1580_s1 }
   0x3   :  { %13 = vsyncpa [#allocation6], 0 }
   0x4   :  { %15 = vsyncpa [#allocation6 + $0x1], 0  ;;  %s1343_s27 = smov 0   ;;  %s1345_s28 = smov 0  }
   0x5   :  { %s1347_s29 = smov 0   ;;  %s1349_s30 = smov 0  }
   0x6 LB: > { %s1588_s9 = sadd.s32 4294967295, %s1288_s30   ;;  %s1090_s10 = sadd.s32 4294967294, %s1288_s30   ;;  %s1288_s30 = sphi %s1349_s30, %s1600_s30   ;;  %s1284_s29 = sphi %s1347_s29, %s1599_s29   ;;  %s1280_s28 = sphi %s1345_s28, %s1598_s28   ;;  %s1276_s27 = sphi %s1343_s27, %s1597_s27  }
   0x7   : > { %s1366_s11 = sadd.s32 1, %s1288_s30   ;;  %s49_s12 = sadd.s32 1, %s1284_s29 }
   0x8   : > { %s46_s13 = ssub.s32 %s1288_s30, %s1366_s11  ;;  %p56_p0 = scmp.ne.s32.totalorder %s1284_s29, %s1280_s28 }
   0x9   : > { %p47_p1 = scmp.eq.s32.totalorder %s46_s13, 0  ;;  %p57_p2 = scmp.eq.s32.totalorder %s1288_s30, 0 }
   0xa   : > { %p222_p3 = scmp.eq.s32.totalorder %s1588_s9, 1  ;;  %p227_p4 = scmp.ne.s32.totalorder %s1280_s28, %s1276_s27 }
   0xb   : > { %s1379_s14 = scalar_select %p47_p1, %s1284_s29, %s49_s12  }
   0xc   : > { %p1381_p5 = por %p57_p2, %p56_p0  ;;  %p1385_p6 = por %p222_p3, %p56_p0 }
   0xd   : > { %p228_p7 = scmp.eq.s32.totalorder %s1090_s10, 1  ;;  %p1092_p9 = scmp.ge.s32.totalorder %s1288_s30, 2 }
   0xf   : > { %p1389_p8 = por %p228_p7, %p227_p4  ;;  %259 = sbr.rel (%p1092_p9) target bundleno = 78 (0x4e), region = 36 }
  0x14   : > { %262 = sbr.rel (!%p1381_p5) target bundleno = 46 (0x2e), region = 40  ;;  %s264_s18 = sand.u32 (%p1381_p5), 1, %s1284_s29  }
  0x15   : > { %s1128_s19 = sshll.u32 (%p1381_p5), %s1288_s30, 5  ;;  %s1093_s20 = sshll.u32 (%p1381_p5), %s264_s18, 7 }
  0x16   : > { %s1594_s1 = sld [smem:[#allocation9_spill]] (%p1381_p5)  ;;  %s266_s24 = scalar_lea.vmem (%p1381_p5), [#allocation2], %s1093_s20 }
  0x1c   : > { %s1403_s23 = scalar_lea.vmem %s1594_s1, %s1128_s19 }
  0x1d   : > { %v328_v0 = vld [vmem:[%s1403_s23] sm:$0xff]  ;;  %v330_v1 = vld [vmem:[%s1403_s23 + $0x8] sm:$0xff]  ;;  %v332_v2 = vld [vmem:[%s1403_s23 + $0x10] sm:$0xff] }
  0x1e   : > { %329 = vst [vmem:[%s266_s24] sm:$0xff] %v328_v0  ;;  %v334_v3 = vld [vmem:[%s1403_s23 + $0x18] sm:$0xff]  ;;  %v336_v4 = vld [vmem:[%s1403_s23 + $0x40] sm:$0xff]  ;;  %v338_v5 = vld [vmem:[%s1403_s23 + $0x48] sm:$0xff] }
  0x1f   : > { %331 = vst [vmem:[%s266_s24 + $0x8] sm:$0xff] %v330_v1  ;;  %v340_v6 = vld [vmem:[%s1403_s23 + $0x50] sm:$0xff]  ;;  %v342_v7 = vld [vmem:[%s1403_s23 + $0x58] sm:$0xff]  ;;  %v344_v8 = vld [vmem:[%s1403_s23 + $0x80] sm:$0xff] }
  0x20   : > { %333 = vst [vmem:[%s266_s24 + $0x10] sm:$0xff] %v332_v2  ;;  %v346_v9 = vld [vmem:[%s1403_s23 + $0x88] sm:$0xff]  ;;  %v348_v10 = vld [vmem:[%s1403_s23 + $0x90] sm:$0xff]  ;;  %v350_v11 = vld [vmem:[%s1403_s23 + $0x98] sm:$0xff] }
  0x21   : > { %335 = vst [vmem:[%s266_s24 + $0x18] sm:$0xff] %v334_v3  ;;  %v352_v12 = vld [vmem:[%s1403_s23 + $0xc0] sm:$0xff]  ;;  %v354_v13 = vld [vmem:[%s1403_s23 + $0xc8] sm:$0xff]  ;;  %v356_v14 = vld [vmem:[%s1403_s23 + $0xd0] sm:$0xff] }
  0x22   : > { %337 = vst [vmem:[%s266_s24 + $0x20] sm:$0xff] %v336_v4  ;;  %v358_v15 = vld [vmem:[%s1403_s23 + $0xd8] sm:$0xff] }
  0x23   : > { %339 = vst [vmem:[%s266_s24 + $0x28] sm:$0xff] %v338_v5 }
  0x24   : > { %341 = vst [vmem:[%s266_s24 + $0x30] sm:$0xff] %v340_v6 }
  0x25   : > { %343 = vst [vmem:[%s266_s24 + $0x38] sm:$0xff] %v342_v7 }
  0x26   : > { %345 = vst [vmem:[%s266_s24 + $0x40] sm:$0xff] %v344_v8 }
  0x27   : > { %347 = vst [vmem:[%s266_s24 + $0x48] sm:$0xff] %v346_v9 }
  0x28   : > { %349 = vst [vmem:[%s266_s24 + $0x50] sm:$0xff] %v348_v10 }
  0x29   : > { %351 = vst [vmem:[%s266_s24 + $0x58] sm:$0xff] %v350_v11 }
  0x2a   : > { %353 = vst [vmem:[%s266_s24 + $0x60] sm:$0xff] %v352_v12 }
  0x2b   : > { %355 = vst [vmem:[%s266_s24 + $0x68] sm:$0xff] %v354_v13 }
  0x2c   : > { %357 = vst [vmem:[%s266_s24 + $0x70] sm:$0xff] %v356_v14 }
  0x2d   : > { %359 = vst [vmem:[%s266_s24 + $0x78] sm:$0xff] %v358_v15 }
  0x2e PF: > { %365 = sbr.rel (!%p1381_p5) target bundleno = 66 (0x42), region = 78  ;;  %s367_s25 = sand.u32 (%p1381_p5), 1, %s1284_s29  }
  0x2f   : > { %s1129_s26 = sshll.u32 (%p1381_p5), %s1288_s30, 5  ;;  %s1096_s10 = sshll.u32 (%p1381_p5), %s367_s25, 7 }
  0x30   : > { %s1428_s18 = scalar_lea.vmem (%p1381_p5), %s1582_s3, %s1129_s26  ;;  %s369_s19 = scalar_lea.vmem (%p1381_p5), [#allocation3], %s1096_s10 }
  0x31   : > { %v431_v16 = vld [vmem:[%s1428_s18] sm:$0xff] (%p1381_p5)  ;;  %v433_v17 = vld [vmem:[%s1428_s18 + $0x8] sm:$0xff] (%p1381_p5)  ;;  %v435_v18 = vld [vmem:[%s1428_s18 + $0x10] sm:$0xff] (%p1381_p5) }
  0x32   : > { %432 = vst [vmem:[%s369_s19] sm:$0xff] (%p1381_p5), %v431_v16  ;;  %v437_v19 = vld [vmem:[%s1428_s18 + $0x18] sm:$0xff] (%p1381_p5)  ;;  %v439_v20 = vld [vmem:[%s1428_s18 + $0x40] sm:$0xff] (%p1381_p5)  ;;  %v441_v21 = vld [vmem:[%s1428_s18 + $0x48] sm:$0xff] (%p1381_p5) }
  0x33   : > { %434 = vst [vmem:[%s369_s19 + $0x8] sm:$0xff] %v433_v17  ;;  %v443_v22 = vld [vmem:[%s1428_s18 + $0x50] sm:$0xff]  ;;  %v445_v23 = vld [vmem:[%s1428_s18 + $0x58] sm:$0xff]  ;;  %v447_v24 = vld [vmem:[%s1428_s18 + $0x80] sm:$0xff] }
  0x34   : > { %436 = vst [vmem:[%s369_s19 + $0x10] sm:$0xff] %v435_v18  ;;  %v449_v25 = vld [vmem:[%s1428_s18 + $0x88] sm:$0xff]  ;;  %v451_v26 = vld [vmem:[%s1428_s18 + $0x90] sm:$0xff]  ;;  %v453_v27 = vld [vmem:[%s1428_s18 + $0x98] sm:$0xff] }
  0x35   : > { %438 = vst [vmem:[%s369_s19 + $0x18] sm:$0xff] %v437_v19  ;;  %v455_v28 = vld [vmem:[%s1428_s18 + $0xc0] sm:$0xff]  ;;  %v457_v29 = vld [vmem:[%s1428_s18 + $0xc8] sm:$0xff]  ;;  %v459_v30 = vld [vmem:[%s1428_s18 + $0xd0] sm:$0xff] }
  0x36   : > { %440 = vst [vmem:[%s369_s19 + $0x20] sm:$0xff] %v439_v20  ;;  %v461_v31 = vld [vmem:[%s1428_s18 + $0xd8] sm:$0xff] }
  0x37   : > { %442 = vst [vmem:[%s369_s19 + $0x28] sm:$0xff] %v441_v21 }
  0x38   : > { %444 = vst [vmem:[%s369_s19 + $0x30] sm:$0xff] %v443_v22 }
  0x39   : > { %446 = vst [vmem:[%s369_s19 + $0x38] sm:$0xff] %v445_v23 }
  0x3a   : > { %448 = vst [vmem:[%s369_s19 + $0x40] sm:$0xff] %v447_v24 }
  0x3b   : > { %450 = vst [vmem:[%s369_s19 + $0x48] sm:$0xff] %v449_v25 }
  0x3c   : > { %452 = vst [vmem:[%s369_s19 + $0x50] sm:$0xff] %v451_v26 }
  0x3d   : > { %454 = vst [vmem:[%s369_s19 + $0x58] sm:$0xff] %v453_v27 }
  0x3e   : > { %456 = vst [vmem:[%s369_s19 + $0x60] sm:$0xff] %v455_v28 }
  0x3f   : > { %458 = vst [vmem:[%s369_s19 + $0x68] sm:$0xff] %v457_v29 }
  0x40   : > { %460 = vst [vmem:[%s369_s19 + $0x70] sm:$0xff] %v459_v30 }
  0x41   : > { %462 = vst [vmem:[%s369_s19 + $0x78] sm:$0xff] %v461_v31 }
  0x42 PF: > { %468 = sbr.rel (!%p1381_p5) target bundleno = 78 (0x4e), region = 116  ;;  %s470_s20 = sand.u32 (%p1381_p5), 1, %s1284_s29  }
  0x43   : > { %s1130_s21 = sshll.u32 (%p1381_p5), %s1288_s30, 4  ;;  %s1099_s22 = sshll.u32 (%p1381_p5), %s470_s20, 6 }
  0x44   : > { %s475_s25 = scalar_lea.vmem (%p1381_p5), %s1583_s4, %s1130_s21  ;;  %s472_s26 = scalar_lea.vmem (%p1381_p5), [#allocation4], %s1099_s22 }
  0x45   : > { %v492_v32 = vld [vmem:[%s475_s25] sm:$0xff] (%p1381_p5)   ;;  %v496_v33 = vld [vmem:[%s475_s25 + $0x8] sm:$0xff] (%p1381_p5)  }
  0x46   : > { %v500_v34 = vld [vmem:[%s475_s25 + $0x20] sm:$0xff] (%p1381_p5)   ;;  %493 = vst [vmem:[%s472_s26] sm:$0xff] (%p1381_p5), %v492_v32   ;;  %v504_v35 = vld [vmem:[%s475_s25 + $0x28] sm:$0xff] (%p1381_p5)  }
  0x47   : > { %497 = vst [vmem:[%s472_s26 + $0x8] sm:$0xff] %v496_v33   ;;  %v508_v36 = vld [vmem:[%s475_s25 + $0x40] sm:$0xff]   ;;  %v512_v37 = vld [vmem:[%s475_s25 + $0x48] sm:$0xff]  }
  0x48   : > { %501 = vst [vmem:[%s472_s26 + $0x10] sm:$0xff] %v500_v34   ;;  %v516_v38 = vld [vmem:[%s475_s25 + $0x60] sm:$0xff]   ;;  %v520_v39 = vld [vmem:[%s475_s25 + $0x68] sm:$0xff]  }
  0x49   : > { %505 = vst [vmem:[%s472_s26 + $0x18] sm:$0xff] %v504_v35  }
  0x4a   : > { %509 = vst [vmem:[%s472_s26 + $0x20] sm:$0xff] %v508_v36  }
  0x4b   : > { %513 = vst [vmem:[%s472_s26 + $0x28] sm:$0xff] %v512_v37  }
  0x4c   : > { %517 = vst [vmem:[%s472_s26 + $0x30] sm:$0xff] %v516_v38  }
  0x4d   : > { %521 = vst [vmem:[%s472_s26 + $0x38] sm:$0xff] %v520_v39  }
  0x4e PF: > { %p1102_p10 = scmp.ge.s32.totalorder %s1288_s30, 1  ;;  %p578_p11 = scmp.lt.s32.totalorder %s1288_s30, 3 }
  0x50   : > { %p579_p12 = pnand %p1102_p10, %p578_p11 }
  0x51   : > { %s1456_s15 = sand.u32 (!%p579_p12), 1, %s1280_s28   ;;  %s1473_s22 = smov (!%p579_p12), 0  }
  0x52   : > { %582 = sbr.rel (%p579_p12) target bundleno = 662 (0x296), region = 157  ;;  %s1103_s10 = sshll.u32 (!%p579_p12), %s1456_s15, 7 }
  0x53   : > { %s1105_s12 = sshll.u32 (!%p579_p12), %s1456_s15, 6  ;;  %s1106_s13 = sshll.u32 (!%p579_p12), %s1456_s15, 5 }
  0x54   : > { %s1461_s18 = scalar_lea.vmem (!%p579_p12), [#allocation5], %s1106_s13  ;;  %s1467_s19 = scalar_lea.vmem (!%p579_p12), [#allocation2], %s1103_s10 }
  0x55   : > { %s1469_s20 = scalar_lea.vmem (!%p579_p12), [#allocation3], %s1103_s10  ;;  %s1471_s21 = scalar_lea.vmem (!%p579_p12), [#allocation4], %s1105_s12 }
  0x57   : > { %v1294_v40 = vmov 0.0  }
  0x58   : > { %644 = vst [vmem:[%s1461_s18] sm:$0xff] %v1294_v40 }
  0x59   : > { %645 = vst [vmem:[%s1461_s18 + $0x8] sm:$0xff] %v1294_v40 }
  0x5a   : > { %646 = vst [vmem:[%s1461_s18 + $0x10] sm:$0xff] %v1294_v40 }
  0x5b   : > { %647 = vst [vmem:[%s1461_s18 + $0x18] sm:$0xff] %v1294_v40 }
  0x5c LB: >> { %s1479_s23 = sshll.u32 %s1292_s22, 5  ;;  %v1295_v43 = vmov 0   ;;  %vm665_vm0 = vcmask 261120   ;;  %s1114_s13 = sshll.u32 %s1292_s22, 6  ;;  %vm809_vm1 = vcmask 523264   ;;  %s1292_s22 = sphi %s1473_s22, %s653_s22  }
  0x5d   : >> { %s660_s26 = scalar_lea.vmem %s1581_s2, %s1479_s23  ;;  %1201 = vset.pattern.permute.xlu0 %v1295_v43  ;;  %s655_s10 = scalar_lea.vmem %s1467_s19, %s1479_s23 [#allocation2]  ;;  %1202 = vset.pattern.permute.xlu1 %v1295_v43 }
  0x5e   : >> { %v664_v41 = vld [vmem:[%s660_s26 + $0x18] sm:$0xff]  ;;  %v663_v42 = vld [vmem:[%s660_s26 + $0x10] sm:$0xff]  ;;  %v662_v44 = vld [vmem:[%s660_s26 + $0x8] sm:$0xff]  ;;  %1203 = vset.pattern.permute.xlu2 %v1295_v43  ;;  %s707_s12 = scalar_lea.vmem %s1469_s20, %s1479_s23 [#allocation3]  ;;  %s1595_s0 = sld [smem:[#allocation8_spill]] }
  0x5f   : >> { %690 = vmatpush.msra.mxu0 %v664_v41  ;;  %v661_v45 = vld [vmem:[%s660_s26] sm:$0xff]  ;;  %v657_v47 = vld [vmem:[%s655_s10 + $0x8] sm:$0xff]  ;;  %v658_v48 = vld [vmem:[%s655_s10 + $0x10] sm:$0xff]  ;;  %s871_s25 = scalar_lea.vmem %s1584_s5, %s1292_s22 }
  0x60   : >> { %v656_v46 = vld [vmem:[%s655_s10] sm:$0xff]  ;;  %v659_v49 = vld [vmem:[%s655_s10 + $0x18] sm:$0xff]  ;;  %v709_v55 = vld [vmem:[%s707_s12 + $0x8] sm:$0xff]  ;;  %s1131_s10 = sshll.u32 %s1292_s22, 4 }
  0x61   : >> { %691 = vmatpush.msra.mxu0 %v663_v42  ;;  %v708_v50 = vld [vmem:[%s707_s12] sm:$0xff]  ;;  %v710_v60 = vld [vmem:[%s707_s12 + $0x10] sm:$0xff]  ;;  %v711_v0 = vld [vmem:[%s707_s12 + $0x18] sm:$0xff]  ;;  %s726_s12 = scalar_lea.vmem %s1471_s21, %s1131_s10 [#allocation4] }
  0x62   : >> { %v1141_v14 = vld [vmem:[%s726_s12 + $0x8] sm:$0xff]   ;;  %v1134_v18 = vld [vmem:[%s726_s12] sm:$0xff]   ;;  %s880_s12 = scalar_lea.vmem %s1585_s6, %s1292_s22  ;;  %s653_s22 = sadd.s32 1, %s1292_s22  }
  0x63   : >> { %692 = vmatpush.msra.mxu0 %v662_v44  ;;  %v1139_v15 = vunpack.c.l.bf16 %v1141_v14  ;;  %v1135_v20 = vunpack.c.l.bf16 %v1134_v18  ;;  %v1136_v29 = vunpack.c.h.bf16 %v1134_v18  ;;  %v1140_v44 = vunpack.c.h.bf16 %v1141_v14  ;;  %p650_p13 = scmp.ge.s32.totalorder %s653_s22, 4  }
  0x64   : >> { %s800_s26 = scalar_lea.vmem %s1595_s0, %s1114_s13  ;;  %s1596_s9 = sadd.s32 (%p650_p13), 4294967295, %s1288_s30  }
  0x65   : >> { %693 = vmatpush.msra.mxu0 %v661_v45  ;;  %v808_v6 = vld [vmem:[%s800_s26 + $0x38] sm:$0xff]  ;;  %v807_v7 = vld [vmem:[%s800_s26 + $0x30] sm:$0xff]  ;;  %v806_v8 = vld [vmem:[%s800_s26 + $0x28] sm:$0xff]  ;;  %s964_s10 = sshll.u32 (%p650_p13), %s1461_s18, 4  ;;  %s1242_s21 = scalar_lea.hbm (%p650_p13), %s1587_s8, 64  ;;  %s965_s10 = int_to_ptr.vmem [resolvable:$true] %s964_s10 }
  0x66   : >> { %1108 = vmatmul.msk.f32.vlgmr.msra.gmra.mxu0 %vm665_vm0, %v656_v46  ;;  %830 = vmatpush.msra.mxu1 %v808_v6  ;;  %v805_v9 = vld [vmem:[%s800_s26 + $0x20] sm:$0xff]  ;;  %v804_v10 = vld [vmem:[%s800_s26 + $0x18] sm:$0xff]  ;;  %v803_v11 = vld [vmem:[%s800_s26 + $0x10] sm:$0xff] }
  0x67   : >> { %1142 = vmatpush.msra.mxu3 %v808_v6  ;;  %v802_v12 = vld [vmem:[%s800_s26 + $0x8] sm:$0xff]  ;;  %v801_v13 = vld [vmem:[%s800_s26] sm:$0xff]  ;;  %s897_s26 = scalar_lea.vmem %s1586_s7, %s1479_s23  ;;  %s952_s23 = scalar_lea.sflag (%p650_p13), [#allocation6], %s1456_s15 }
  0x68   : >> { %831 = vmatpush.msra.mxu1 %v807_v7 }
  0x69   : >> { %1143 = vmatpush.msra.mxu3 %v807_v7 }
  0x6a   : >> { %832 = vmatpush.msra.mxu1 %v806_v8 }
  0x6b   : >> { %1144 = vmatpush.msra.mxu3 %v806_v8 }
  0x6c   : >> { %833 = vmatpush.msra.mxu1 %v805_v9 }
  0x6d   : >> { %1145 = vmatpush.msra.mxu3 %v805_v9 }
  0x6e   : >> { %1109 = vmatmul.msk.f32.gmra.mxu0 %vm665_vm0, %v657_v47  ;;  %834 = vmatpush.msra.mxu1 %v804_v10 }
  0x6f   : >> { %1146 = vmatpush.msra.mxu3 %v804_v10 }
  0x70   : >> { %835 = vmatpush.msra.mxu1 %v803_v11 }
  0x71   : >> { %1147 = vmatpush.msra.mxu3 %v803_v11 }
  0x72   : >> { %836 = vmatpush.msra.mxu1 %v802_v12 }
  0x73   : >> { %1148 = vmatpush.msra.mxu3 %v802_v12 }
  0x74   : >> { %837 = vmatpush.msra.mxu1 %v801_v13 }
  0x75   : >> { %1149 = vmatpush.msra.mxu3 %v801_v13 }
  0x76   : >> { %1110 = vmatmul.msk.f32.gmra.mxu0 %vm665_vm0, %v658_v48 }
  0x7e   : >> { %1111 = vmatmul.msk.f32.gmra.mxu0 %vm665_vm0, %v659_v49 }
  0xe3   : >> { %v695_v51 = vpop.f32.mrf.mxu0 }
  0xe4   : >> { %v712_v52 = vadd.f32 %v708_v50, %v695_v51  ;;  %737 = vperm.xlu0 %1201, %v695_v51  }
  0xe6   : >> { %v716_v53 = vmul.f32 0.2, %v712_v52 }
  0xe8   : >> { %v720_v54 = vmax.f32 %v712_v52, %v716_v53 }
  0xea   : >> { %769 = vperm.xlu1 %1202, %v720_v54  }
  0xeb   : >> { %v698_v56 = vpop.f32.mrf.mxu0 }
  0xec   : >> { %v713_v57 = vadd.f32 %v709_v55, %v698_v56  ;;  %742 = vperm.xlu0 %1201, %v698_v56   ;;  %v901_v56 = vld [vmem:[%s897_s26 + $0x18] sm:$0xff] }
  0xed   : >> { %926 = vmatpush.msra.mxu2 %v901_v56 }
  0xee   : >> { %v717_v58 = vmul.f32 0.2, %v713_v57 }
  0xf0   : >> { %v721_v59 = vmax.f32 %v713_v57, %v717_v58  ;;  %v900_v57 = vld [vmem:[%s897_s26 + $0x10] sm:$0xff]  ;;  %v899_v58 = vld [vmem:[%s897_s26 + $0x8] sm:$0xff] }
  0xf1   : >> { %927 = vmatpush.msra.mxu2 %v900_v57 }
  0xf2   : >> { %774 = vperm.xlu1 %1202, %v721_v59   ;;  %v898_v59 = vld [vmem:[%s897_s26] sm:$0xff] }
  0xf3   : >> { %v701_v61 = vpop.f32.mrf.mxu0  ;;  %928 = vmatpush.msra.mxu2 %v899_v58 }
  0xf4   : >> { %v714_v62 = vadd.f32 %v710_v60, %v701_v61  ;;  %747 = vperm.xlu2 %1203, %v701_v61   ;;  %v1204_v61 = vld [vmem:[%s871_s25] ss:$0 sm:$0xff]  ;;  %s1132_s25 = sshll.u32 (%p650_p13), %s1596_s9, 5 }
  0xf5   : >> { %929 = vmatpush.msra.mxu2 %v898_v59  ;;  %s963_s26 = scalar_lea.hbm (%p650_p13), %s1587_s8, %s1132_s25 }
  0xf6   : >> { %v718_v63 = vmul.f32 0.2, %v714_v62  ;;  %s966_s13 = sshll.u32 (%p650_p13), %s963_s26, 4  ;;  %s967_s13 = int_to_ptr.hbm [resolvable:$true] %s966_s13 }
  0xf7   : > { %s1236_s0 = sshra.s32 (%p650_p13), %s967_s13, 4  ;;  %s1237_s0 = int_to_ptr.hbm [resolvable:$true] %s1236_s0 }
  0xf8   : >> { %v722_v1 = vmax.f32 %v714_v62, %v718_v63  ;;  %s1238_s1 = scalar_lea.hbm (%p650_p13), %s1237_s0, 32  ;;  %p1243_p3 = scmp.lt.s32.totalorder (%p650_p13), %s1237_s0, %s1587_s8 }
  0xf9   : > { %p1239_p0 = scmp.ne.s32.totalorder (%p650_p13), %s1237_s0, %s1238_s1  ;;  %p1244_p4 = scmp.lt.s32.totalorder (%p650_p13), %s1242_s21, %s1238_s1 }
  0xfb   : >> { %v704_v2 = vpop.f32.mrf.mxu0  ;;  %p1240_p1 = pnand (%p650_p13), %p1239_p0, %p1385_p6  ;;  %p1245_p5 = por (%p650_p13), %p1244_p4, %p1243_p3 }
  0xfc   : >> { %v715_v3 = vadd.f32 %v711_v0, %v704_v2  ;;  %779 = vperm.xlu2 %1203, %v722_v1   ;;  %752 = vperm.xlu0 %1201, %v704_v2   ;;  %v1205_v1 = vld [vmem:[%s880_s12] ss:$0 sm:$0xff] }
  0xfd   : > { %p1241_p2 = pneg (%p650_p13), %p1240_p1 }
  0xfe   : >> { %v719_v4 = vmul.f32 0.2, %v715_v3 }
  0xff   : > { %p1246_p7 = pnand (%p650_p13), %p1245_p5, %p1241_p2 }
 0x100   : >> { %v723_v5 = vmax.f32 %v715_v3, %v719_v4 }
 0x102   : >> { %784 = vperm.xlu1 %1202, %v723_v5  }
 0x14e   : >> { %v748_v16 = vpop.permute.xlu2 %747 }
 0x14f   : >> { %v757_v17 = vadd.f32 %v1139_v15, %v748_v16 }
 0x151   : >> { %v761_v19 = vmul.f32 0.2, %v757_v17 }
 0x153   : >> { %v765_v21 = vmax.f32 %v757_v17, %v761_v19 }
 0x156   : >> { %v738_v22 = vpop.permute.xlu0 %737  ;;  %v780_v23 = vpop.permute.xlu2 %779 }
 0x157   : >> { %v755_v24 = vadd.f32 %v1135_v20, %v738_v22  ;;  %v789_v25 = vsub.f32 %v765_v21, %v780_v23 }
 0x159   : >> { %v759_v26 = vmul.f32 0.2, %v755_v24  ;;  %v795_v27 = vmul.f32 1.442695, %v789_v25 }
 0x15b   : >> { %1206 = vpow2.f32 %v795_v27  ;;  %v763_v28 = vmax.f32 %v755_v24, %v759_v26  ;;  %v893_v26 = vld [vmem:[%s1461_s18] sm:$0xff] }
 0x15c   : >> { %v770_v30 = vpop.permute.xlu1 %769 }
 0x15d   : >> { %v787_v31 = vsub.f32 %v763_v28, %v770_v30 }
 0x15e   : >> { %v743_v32 = vpop.permute.xlu0 %742 }
 0x15f   : >> { %v791_v33 = vmul.f32 1.442695, %v787_v31  ;;  %v756_v34 = vadd.f32 %v1136_v29, %v743_v32  ;;  %v894_v29 = vld [vmem:[%s1461_s18 + $0x8] sm:$0xff]  ;;  %v895_v32 = vld [vmem:[%s1461_s18 + $0x10] sm:$0xff] }
 0x161   : >> { %v1207_v35 = vpop.eup %1206  ;;  %1208 = vpow2.f32 %v791_v33  ;;  %v760_v36 = vmul.f32 0.2, %v756_v34 }
 0x162   : >> { %v857_v37 = vsel %vm809_vm1, %v1207_v35, 0.0 }
 0x163   : >> { %858 = vadd.xlane.f32.xlu1 %v857_v37  ;;  %v764_v38 = vmax.f32 %v756_v34, %v760_v36 }
 0x164   : >> { %v775_v39 = vpop.permute.xlu1 %774 }
 0x165   : >> { %v788_v40 = vsub.f32 %v764_v38, %v775_v39 }
 0x167   : >> { %v1209_v41 = vpop.eup %1208  ;;  %v793_v42 = vmul.f32 1.442695, %v788_v40 }
 0x168   : >> { %1115 = vmatmul.msk.f32.vlgmr.msra.gmra.mxu1 %vm809_vm1, %v1209_v41  ;;  %v851_v43 = vsel %vm809_vm1, %v1209_v41, 0.0 }
 0x169   : >> { %1210 = vpow2.f32 %v793_v42  ;;  %852 = vadd.xlane.f32.xlu2 %v851_v43 }
 0x16e   : >> { %v753_v45 = vpop.permute.xlu0 %752 }
 0x16f   : >> { %v1211_v46 = vpop.eup %1210  ;;  %v758_v47 = vadd.f32 %v1140_v44, %v753_v45 }
 0x170   : >> { %1116 = vmatmul.msk.f32.vlgmr.msra.gmra.mxu3 %vm809_vm1, %v1211_v46  ;;  %v854_v48 = vsel %vm809_vm1, %v1211_v46, 0.0 }
 0x171   : >> { %v762_v49 = vmul.f32 0.2, %v758_v47  ;;  %855 = vadd.xlane.f32.xlu0 %v854_v48 }
 0x173   : >> { %v766_v50 = vmax.f32 %v758_v47, %v762_v49 }
 0x174   : >> { %v785_v51 = vpop.permute.xlu1 %784 }
 0x175   : >> { %v790_v52 = vsub.f32 %v766_v50, %v785_v51 }
 0x177   : >> { %v797_v53 = vmul.f32 1.442695, %v790_v52 }
 0x178   : >> { %1117 = vmatmul.msk.f32.gmra.mxu3 %vm809_vm1, %v1207_v35  ;;  %v896_v35 = vld [vmem:[%s1461_s18 + $0x18] sm:$0xff] }
 0x179   : >> { %1212 = vpow2.f32 %v797_v53 }
 0x17f   : >> { %v1213_v54 = vpop.eup %1212 }
 0x180   : >> { %1118 = vmatmul.msk.f32.gmra.mxu3 %vm809_vm1, %v1213_v54  ;;  %v860_v55 = vsel %vm809_vm1, %v1213_v54, 0.0 }
 0x181   : >> { %861 = vadd.xlane.f32.xlu2 %v860_v55 }
 0x1d6   : >> { %v859_v6 = vpop.xlane.xlu1 %858 }
 0x1dc   : >> { %v853_v60 = vpop.xlane.xlu2 %852 }
 0x1dd   : >> { %1214 = vrcp.f32 %v853_v60 }
 0x1e3   : >> { %v1215_v62 = vpop.eup %1214 }
 0x1e4   : >> { %v856_v3 = vpop.xlane.xlu0 %855 }
 0x1e5   : >> { %v839_v63 = vpop.f32.mrf.mxu1  ;;  %1216 = vrcp.f32 %v856_v3 }
 0x1e6   : >> { %v867_v0 = vmul.f32 %v1215_v62, %v839_v63  ;;  %1218 = vrcp.f32 %v859_v6 }
 0x1e8   : >> { %v876_v2 = vmul.f32 %v1204_v61, %v867_v0 }
 0x1ea   : >> { %v885_v4 = vadd.f32 %v1205_v1, %v876_v2 }
 0x1eb   : >> { %v1217_v7 = vpop.eup %1216 }
 0x1ec   : >> { %v889_v5 = vmax.f32 %v885_v4, 0.0  ;;  %v1219_v14 = vpop.eup %1218 }
 0x1ee   : >> { %1119 = vmatmul.msk.f32.vlgmr.msra.gmra.mxu2 %vm665_vm0, %v889_v5 }
 0x1f3   : >> { %v842_v8 = vpop.f32.mrf.mxu3 }
 0x1f4   : >> { %v868_v9 = vmul.f32 %v1217_v7, %v842_v8  ;;  %v862_v12 = vpop.xlane.xlu2 %861 }
 0x1f5   : >> { %1220 = vrcp.f32 %v862_v12 }
 0x1f6   : >> { %v877_v10 = vmul.f32 %v1204_v61, %v868_v9 }
 0x1f8   : >> { %v886_v11 = vadd.f32 %v1205_v1, %v877_v10 }
 0x1fa   : >> { %v890_v13 = vmax.f32 %v886_v11, 0.0 }
 0x1fb   : >> { %v845_v15 = vpop.f32.mrf.mxu3  ;;  %v1221_v20 = vpop.eup %1220 }
 0x1fc   : >> { %v869_v16 = vmul.f32 %v1219_v14, %v845_v15  ;;  %1120 = vmatmul.msk.f32.gmra.mxu2 %vm665_vm0, %v890_v13 }
 0x1fe   : >> { %v878_v17 = vmul.f32 %v1204_v61, %v869_v16 }
 0x200   : >> { %v887_v18 = vadd.f32 %v1205_v1, %v878_v17 }
 0x202   : >> { %v891_v19 = vmax.f32 %v887_v18, 0.0 }
 0x203   : >> { %v848_v21 = vpop.f32.mrf.mxu3 }
 0x204   : >> { %v870_v22 = vmul.f32 %v1221_v20, %v848_v21  ;;  %1121 = vmatmul.msk.f32.gmra.mxu2 %vm665_vm0, %v891_v19 }
 0x206   : >> { %v879_v23 = vmul.f32 %v1204_v61, %v870_v22 }
 0x208   : >> { %v888_v24 = vadd.f32 %v1205_v1, %v879_v23 }
 0x20a   : >> { %v892_v25 = vmax.f32 %v888_v24, 0.0 }
 0x20c   : >> { %1122 = vmatmul.msk.f32.gmra.mxu2 %vm665_vm0, %v892_v25 }
 0x271   : >> { %v931_v27 = vpop.f32.mrf.mxu2 }
 0x272   : >> { %v943_v28 = vadd.f32 %v931_v27, %v893_v26 }
 0x274   : >> { %947 = vst [vmem:[%s1461_s18] sm:$0xff] %v943_v28 }
 0x27f   : >> { %v934_v30 = vpop.f32.mrf.mxu2 }
 0x280   : >> { %v944_v31 = vadd.f32 %v934_v30, %v894_v29 }
 0x282   : >> { %948 = vst [vmem:[%s1461_s18 + $0x8] sm:$0xff] %v944_v31 }
 0x287   : >> { %v937_v33 = vpop.f32.mrf.mxu2 }
 0x288   : >> { %v945_v34 = vadd.f32 %v937_v33, %v895_v32 }
 0x28a   : >> { %949 = vst [vmem:[%s1461_s18 + $0x10] sm:$0xff] %v945_v34 }
 0x28e   : > { %652 = sbr.rel (!%p650_p13) target bundleno = 92 (0x5c), region = 240 }
 0x28f   : >> { %v940_v36 = vpop.f32.mrf.mxu2 }
 0x290   : >> { %v946_v37 = vadd.f32 %v940_v36, %v896_v35 }
 0x292   : >> { %950 = vst [vmem:[%s1461_s18 + $0x18] sm:$0xff] %v946_v37 }
 0x293   : > { %1249 = shalt.err (!%p1246_p7)
}
 0x294   : > { %s1296_s15 = smov 128   ;;  %s1297_s18 = smov 8  }
 0x295   : > { %1150 = dma.vmem_to_hbm [thread:$0]  (%p1385_p6), %s965_s10, 512, %s967_s13, %s952_s23, %s1296_s15, %s1296_s15, %s1297_s18  }
 0x296 PF: > { %s981_s25 = sand.u32 1, %s1276_s27   ;;  %p1153_p10 = pnand %p1092_p9, %p1389_p8 }
 0x297   : > { %s982_s12 = scalar_lea.sflag [#allocation6], %s981_s25 }
 0x298   : > { %p1154_p11 = pneg %p1153_p10 }
 0x29a   : > { %1271 = dma.done.wait (%p1154_p11), %s982_s12, 512  }
 0x29b   : > { %1273 = vsyncadd (%p1154_p11), %s982_s12, 4294966784  ;;  %p18_p12 = scmp.ge.s32.totalorder %s1366_s11, 4   ;;  %s1597_s27 = smov %s1280_s28 }
 0x29c   : > { %s1598_s28 = smov %s1284_s29  ;;  %s1599_s29 = smov %s1379_s14 }
 0x29d   : > { %s1600_s30 = smov %s1366_s11  ;;  %20 = sbr.rel (!%p18_p12) target bundleno = 6 (0x6), region = 251 }
 0x2a2   :  { %988 = vsyncpa [#allocation6], 1 }
 0x2a3   :  { %990 = vsyncpa [#allocation6 + $0x1], 1 }

</bundles_post_ra>
